<compile_context>
chip_gen: v7x
topology: tpu7x:2x2x1
jax: 0.10.0
libtpu: 0.0.40
codegen_flags: <defaults>
</compile_context>

<pallas_src>
import jax
import jax.numpy as jnp
import numpy as np
from jax.experimental import pallas as pl
from jax.experimental.pallas import tpu as pltpu

_BN_EPS = 1e-5
_LANE = 128
_VMEM_LIMIT = 32 * 1024 * 1024   # fits v7x (64 MiB physical) as well as v5e/v6e


# ----------------------------------------------------------------------------
# small shape helpers
# ----------------------------------------------------------------------------
def _round_up(x, m):
    return (x + m - 1) // m * m


def _pad_axis(a, axis, target):
    if a.shape[axis] == target:
        return a
    widths = [(0, 0)] * a.ndim
    widths[axis] = (0, target - a.shape[axis])
    return jnp.pad(a, widths)


def _choose_tm(m):
    """Row-tile size and padded row count (rows beyond m are masked in stats)."""
    if m <= 1024:
        tm = _round_up(m, 16)
        return tm, tm
    return 512, _round_up(m, 512)


# ----------------------------------------------------------------------------
# Kernel 1: tiled matmul (+ optional fused input BN/ReLU) + per-tile BN stats
# ----------------------------------------------------------------------------
def _make_matmul_stats_kernel(fuse_input_bn, m_real, tm, needs_mask):
    def kernel(*refs):
        if fuse_input_bn:
            x_ref, isc_ref, ish_ref, w_ref, z_ref, psum_ref, psq_ref, acc_ref = refs
        else:
            x_ref, w_ref, z_ref, psum_ref, psq_ref, acc_ref = refs
        k = pl.program_id(1)

        @pl.when(k == 0)
        def _init():
            acc_ref[...] = jnp.zeros_like(acc_ref)

        x = x_ref[...]
        if fuse_input_bn:
            # fused epilogue of the previous stage: BN affine + ReLU (f32 math)
            a = jnp.maximum(x.astype(jnp.float32) * isc_ref[...] + ish_ref[...], 0.0)
            x = a.astype(jnp.bfloat16)
        acc_ref[...] += jnp.dot(x, w_ref[...], preferred_element_type=jnp.float32)

        @pl.when(k == pl.num_programs(1) - 1)
        def _finalize():
            z = acc_ref[...]
            z_ref[...] = z.astype(z_ref.dtype)
            if needs_mask:  # rows >= m_real are padding: keep them out of the stats
                rows = (jax.lax.broadcasted_iota(jnp.int32, (tm, 1), 0)
                        + pl.program_id(0) * tm)
                z = jnp.where(rows < m_real, z, 0.0)
            psum_ref[...] = jnp.sum(z, axis=0)[None, None, :]
            psq_ref[...] = jnp.sum(z * z, axis=0)[None, None, :]

    return kernel


def _matmul_stats(x2d, w, *, m_real, in_scale=None, in_shift=None):
    """z = act(x) @ w, plus per-M-tile channel sum / sum-of-squares outputs.

    act(x) is the identity, or (when in_scale/in_shift are given) the fused
    BN-affine + ReLU epilogue of the previous stage applied to the streamed
    input tiles.  Grid = (M tiles ["parallel"], K tiles ["arbitrary"]).
    """
    mp, kdim = x2d.shape
    cdim = w.shape[1]
    tm = mp if mp <= 1024 else 512
    tk = 512 if kdim % 512 == 0 else (256 if kdim % 256 == 0 else 128)
    num_m, num_k = mp // tm, kdim // tk
    fuse = in_scale is not None
    kernel = _make_matmul_stats_kernel(fuse, m_real, tm, needs_mask=(mp > m_real))

    in_specs = [pl.BlockSpec((tm, tk), lambda i, k: (i, k))]
    args = [x2d]
    if fuse:
        in_specs += [pl.BlockSpec((1, tk), lambda i, k: (0, k)),
                     pl.BlockSpec((1, tk), lambda i, k: (0, k))]
        args += [in_scale, in_shift]
    in_specs.append(pl.BlockSpec((tk, cdim), lambda i, k: (k, 0)))
    args.append(w)

    out_shape = (jax.ShapeDtypeStruct((mp, cdim), jnp.bfloat16),
                 jax.ShapeDtypeStruct((num_m, 1, cdim), jnp.float32),
                 jax.ShapeDtypeStruct((num_m, 1, cdim), jnp.float32))
    out_specs = [pl.BlockSpec((tm, cdim), lambda i, k: (i, 0)),
                 pl.BlockSpec((1, 1, cdim), lambda i, k: (i, 0, 0)),
                 pl.BlockSpec((1, 1, cdim), lambda i, k: (i, 0, 0))]

    flops = 2 * mp * kdim * cdim
    bytes_accessed = int(mp * kdim * 2 + num_m * kdim * cdim * 2
                         + mp * cdim * 2 + 2 * num_m * cdim * 4)

    return pl.pallas_call(
        kernel,
        out_shape=out_shape,
        grid_spec=pltpu.PrefetchScalarGridSpec(
            num_scalar_prefetch=0,
            grid=(num_m, num_k),
            in_specs=in_specs,
            out_specs=out_specs,
            scratch_shapes=[pltpu.VMEM((tm, cdim), jnp.float32)]),
        compiler_params=pltpu.CompilerParams(
            dimension_semantics=("parallel", "arbitrary"),
            vmem_limit_bytes=_VMEM_LIMIT),
        cost_estimate=pl.CostEstimate(flops=int(flops), transcendentals=0,
                                      bytes_accessed=bytes_accessed),
    )(*args)


# ----------------------------------------------------------------------------
# BN finalize (tiny O(C) glue) and the elementwise apply kernels
# ----------------------------------------------------------------------------
def _finalize_bn(psum, psq, m_real, gamma_p, beta_p, eps=_BN_EPS):
    s = jnp.sum(psum, axis=0)                    # (1, C)
    q = jnp.sum(psq, axis=0)                     # (1, C)
    mean = s / float(m_real)
    var = jnp.maximum(q / float(m_real) - mean * mean, 0.0)
    scale = gamma_p.reshape(1, -1).astype(jnp.float32) * jax.lax.rsqrt(var + eps)
    shift = beta_p.reshape(1, -1).astype(jnp.float32) - mean * scale
    return scale, shift


def _bn_relu_kernel(z_ref, sc_ref, sh_ref, o_ref):
    y = z_ref[...].astype(jnp.float32) * sc_ref[...] + sh_ref[...]
    o_ref[...] = jnp.maximum(y, 0.0).astype(o_ref.dtype)


def _bn_relu(z, scale, shift, out_dtype=jnp.bfloat16):
    mp, cdim = z.shape
    tm = mp if mp <= 1024 else 512
    num_m = mp // tm
    row = pl.BlockSpec((tm, cdim), lambda i: (i, 0))
    vec = pl.BlockSpec((1, cdim), lambda i: (0, 0))
    return pl.pallas_call(
        _bn_relu_kernel,
        out_shape=jax.ShapeDtypeStruct((mp, cdim), out_dtype),
        grid_spec=pltpu.PrefetchScalarGridSpec(
            num_scalar_prefetch=0, grid=(num_m,),
            in_specs=[row, vec, vec], out_specs=row),
        compiler_params=pltpu.CompilerParams(
            dimension_semantics=("parallel",),
            vmem_limit_bytes=_VMEM_LIMIT),
    )(z, scale, shift)


def _make_bn_add_relu_kernel(has_projection):
    if has_projection:
        def kernel(z_ref, sc_ref, sh_ref, r_ref, rsc_ref, rsh_ref, o_ref):
            y = z_ref[...].astype(jnp.float32) * sc_ref[...] + sh_ref[...]
            r = r_ref[...].astype(jnp.float32) * rsc_ref[...] + rsh_ref[...]
            o_ref[...] = jnp.maximum(y + r, 0.0).astype(o_ref.dtype)
    else:
        def kernel(z_ref, sc_ref, sh_ref, r_ref, o_ref):
            y = z_ref[...].astype(jnp.float32) * sc_ref[...] + sh_ref[...]
            o_ref[...] = jnp.maximum(y + r_ref[...].astype(jnp.float32),
                                     0.0).astype(o_ref.dtype)
    return kernel


def _bn_add_relu(z, scale, shift, res, rscale=None, rshift=None):
    mp, cdim = z.shape
    tm = mp if mp <= 1024 else 512
    num_m = mp // tm
    has_projection = rscale is not None
    row = pl.BlockSpec((tm, cdim), lambda i: (i, 0))
    vec = pl.BlockSpec((1, cdim), lambda i: (0, 0))
    in_specs = [row, vec, vec, row]
    args = [z, scale, shift, res]
    if has_projection:
        in_specs += [vec, vec]
        args += [rscale, rshift]
    return pl.pallas_call(
        _make_bn_add_relu_kernel(has_projection),
        out_shape=jax.ShapeDtypeStruct((mp, cdim), jnp.float32),
        grid_spec=pltpu.PrefetchScalarGridSpec(
            num_scalar_prefetch=0, grid=(num_m,),
            in_specs=in_specs, out_specs=row),
        compiler_params=pltpu.CompilerParams(
            dimension_semantics=("parallel",),
            vmem_limit_bytes=_VMEM_LIMIT),
    )(*args)


# ----------------------------------------------------------------------------
# JAX glue: im2col for the 3x3 / stride-s conv, weight packing (data movement)
# ----------------------------------------------------------------------------
# TODO(synk): stream the 9 taps of the 3x3 conv directly from the padded NHWC
# activation inside the matmul kernel (manual make_async_copy of shifted row
# windows) to remove this 9x im2col HBM intermediate; for now it is built in
# bf16 and K-tiled so it is never fully VMEM-resident.
def _im2col_3x3(y, stride):
    n, h, w, c = y.shape
    ho = (h - 1) // stride + 1
    wo = (w - 1) // stride + 1
    yp = jnp.pad(y, ((0, 0), (1, 1), (1, 1), (0, 0)))
    cols = []
    for kh in range(3):
        for kw in range(3):
            patch = jax.lax.slice(
                yp,
                (0, kh, kw, 0),
                (n, kh + stride * (ho - 1) + 1, kw + stride * (wo - 1) + 1, c),
                (1, stride, stride, 1))
            cols.append(patch)
    return jnp.concatenate(cols, axis=-1), ho, wo


def _conv1x1_matrix(w, kin_p, kout_p):
    # (Cout, Cin, 1, 1) -> (Cin_p, Cout_p), zero padded, bf16
    m = w[:, :, 0, 0].T
    return _pad_axis(_pad_axis(m, 0, kin_p), 1, kout_p).astype(jnp.bfloat16)


def _conv3x3_matrix(w, c_p):
    # (Cout, Cin, 3, 3) -> (9*Cin_p, Cout_p), tap-major rows matching _im2col_3x3
    wt = jnp.transpose(w, (2, 3, 1, 0))                    # (3, 3, Cin, Cout)
    wt = _pad_axis(_pad_axis(wt, 2, c_p), 3, c_p)
    return wt.reshape(9 * c_p, c_p).astype(jnp.bfloat16)


# ----------------------------------------------------------------------------
# Parameter init (deterministic, synthetic)
# ----------------------------------------------------------------------------
def init_bottleneck_params(key, in_planes, places, expansion=4, downsampling=False):
    out_planes = places * expansion
    ks = jax.random.split(key, 16)
    p = {
        "w1": 0.1 * jax.random.normal(ks[0], (places, in_planes, 1, 1), jnp.float32),
        "g1": 1.0 + 0.1 * jax.random.normal(ks[1], (places,), jnp.float32),
        "b1": 0.1 * jax.random.normal(ks[2], (places,), jnp.float32),
        "w2": 0.1 * jax.random.normal(ks[3], (places, places, 3, 3), jnp.float32),
        "g2": 1.0 + 0.1 * jax.random.normal(ks[4], (places,), jnp.float32),
        "b2": 0.1 * jax.random.normal(ks[5], (places,), jnp.float32),
        "w3": 0.1 * jax.random.normal(ks[6], (out_planes, places, 1, 1), jnp.float32),
        "g3": 1.0 + 0.1 * jax.random.normal(ks[7], (out_planes,), jnp.float32),
        "b3": 0.1 * jax.random.normal(ks[8], (out_planes,), jnp.float32),
    }
    if downsampling:
        p["wd"] = 0.1 * jax.random.normal(ks[9], (out_planes, in_planes, 1, 1), jnp.float32)
        p["bd"] = 0.1 * jax.random.normal(ks[10], (out_planes,), jnp.float32)  # bias=1 -> True
        p["gd"] = 1.0 + 0.1 * jax.random.normal(ks[11], (out_planes,), jnp.float32)
        p["bbd"] = 0.1 * jax.random.normal(ks[12], (out_planes,), jnp.float32)
    return p


# ----------------------------------------------------------------------------
# Bottleneck forward (Pallas)
# ----------------------------------------------------------------------------
def bottleneck_forward(x_nchw, params, *, stride=1, downsampling=False, expansion=4):
    n, cin, h, w = x_nchw.shape
    places = params["w1"].shape[0]
    cout = places * expansion

    cin_p = _round_up(cin, _LANE)
    p_p = _round_up(places, _LANE)
    cout_p = _round_up(cout, _LANE)

    # Layout glue: NCHW -> NHWC, channels zero-padded to a lane multiple, bf16.
    x_nhwc = jnp.transpose(x_nchw, (0, 2, 3, 1))
    x_pad = _pad_axis(x_nhwc, 3, cin_p).astype(jnp.bfloat16)

    m1 = n * h * w
    _, m1p = _choose_tm(m1)
    x2d = _pad_axis(x_pad.reshape(m1, cin_p), 0, m1p)

    # --- stage 1: 1x1 conv -> BN -> ReLU --------------------------------------
    w1m = _conv1x1_matrix(params["w1"], cin_p, p_p)
    z1, s1, q1 = _matmul_stats(x2d, w1m, m_real=m1)
    sc1, sh1 = _finalize_bn(s1, q1, m1,
                            _pad_axis(params["g1"], 0, p_p),
                            _pad_axis(params["b1"], 0, p_p))
    a1 = _bn_relu(z1, sc1, sh1)                        # bf16 (m1p, p_p)
    a1_nhwc = a1[:m1].reshape(n, h, w, p_p)

    # --- stage 2: 3x3 conv (stride) -> BN stats (affine+ReLU fused into stage 3)
    cols, ho, wo = _im2col_3x3(a1_nhwc, stride)
    m2 = n * ho * wo
    _, m2p = _choose_tm(m2)
    cols2d = _pad_axis(cols.reshape(m2, 9 * p_p), 0, m2p)
    w2m = _conv3x3_matrix(params["w2"], p_p)
    z2, s2, q2 = _matmul_stats(cols2d, w2m, m_real=m2)
    sc2, sh2 = _finalize_bn(s2, q2, m2,
                            _pad_axis(params["g2"], 0, p_p),
                            _pad_axis(params["b2"], 0, p_p))

    # --- stage 3 matmul: stage-2's BN+ReLU epilogue fused on its input stream --
    w3m = _conv1x1_matrix(params["w3"], p_p, cout_p)
    z3, s3, q3 = _matmul_stats(z2, w3m, m_real=m2, in_scale=sc2, in_shift=sh2)
    sc3, sh3 = _finalize_bn(s3, q3, m2,
                            _pad_axis(params["g3"], 0, cout_p),
                            _pad_axis(params["b3"], 0, cout_p))

    # --- shortcut + final BN / add / ReLU in one fused apply kernel ------------
    if downsampling:
        xs = _pad_axis(x_pad[:, ::stride, ::stride, :].reshape(m2, cin_p), 0, m2p)
        wdm = _conv1x1_matrix(params["wd"], cin_p, cout_p)
        # NOTE: the downsample conv bias `bd` is dropped on purpose: a per-channel
        # bias feeding directly into training-mode BatchNorm cancels exactly (the
        # batch mean absorbs it), so the block output is unchanged.
        zd, sd, qd = _matmul_stats(xs, wdm, m_real=m2)
        scd, shd = _finalize_bn(sd, qd, m2,
                                _pad_axis(params["gd"], 0, cout_p),
                                _pad_axis(params["bbd"], 0, cout_p))
        out2d = _bn_add_relu(z3, sc3, sh3, zd, scd, shd)
    else:
        assert stride == 1 and cin == cout, "identity shortcut needs matching shapes"
        out2d = _bn_add_relu(z3, sc3, sh3, x2d)

    out = out2d[:m2, :cout].reshape(n, ho, wo, cout)
    return jnp.transpose(out, (0, 3, 1, 2))            # back to NCHW


# ----------------------------------------------------------------------------
# Pure-JAX reference (mirrors the PyTorch module forward, training-mode BN)
# ----------------------------------------------------------------------------
def reference_forward(x, p, *, stride, downsampling):
    def bn(z, g, b):
        m = jnp.mean(z, axis=(0, 2, 3), keepdims=True)
        v = jnp.mean((z - m) ** 2, axis=(0, 2, 3), keepdims=True)
        return (z - m) / jnp.sqrt(v + _BN_EPS) * g.reshape(1, -1, 1, 1) + b.reshape(1, -1, 1, 1)

    def conv(z, w, s=1, pad=0):
        return jax.lax.conv_general_dilated(
            z, w, (s, s), [(pad, pad), (pad, pad)],
            dimension_numbers=("NCHW", "OIHW", "NCHW"))

    out = jax.nn.relu(bn(conv(x, p["w1"]), p["g1"], p["b1"]))
    out = jax.nn.relu(bn(conv(out, p["w2"], s=stride, pad=1), p["g2"], p["b2"]))
    out = bn(conv(out, p["w3"]), p["g3"], p["b3"])
    if downsampling:
        res = bn(conv(x, p["wd"], s=stride) + p["bd"].reshape(1, -1, 1, 1), p["gd"], p["bbd"])
    else:
        res = x
    return jax.nn.relu(out + res)


if __name__ == "__main__":
    key = jax.random.PRNGKey(0)
    configs = [
        # (in_planes, places, stride, downsampling)  -- small synthetic shapes
        dict(in_planes=32, places=8, stride=1, downsampling=False),  # identity shortcut
        dict(in_planes=16, places=8, stride=2, downsampling=True),   # projection shortcut
    ]
    n, h, w = 2, 8, 8
    for i, cfg in enumerate(configs):
        kx, kp = jax.random.split(jax.random.fold_in(key, i))
        x = jax.random.normal(kx, (n, cfg["in_planes"], h, w), jnp.float32)
        params = init_bottleneck_params(
            kp, cfg["in_planes"], cfg["places"], expansion=4,
            downsampling=cfg["downsampling"])

        out = bottleneck_forward(
            x, params, stride=cfg["stride"], downsampling=cfg["downsampling"], expansion=4)
        out = jax.block_until_ready(out)

        ref = reference_forward(
            x, params, stride=cfg["stride"], downsampling=cfg["downsampling"])
        np.testing.assert_allclose(np.asarray(out), np.asarray(ref), atol=5e-2, rtol=5e-2)

    print("KERNEL_OK")
</pallas_src>

<mosaic_0001>
module attributes {stable_mosaic.version = 11 : i64} {
  func.func @kernel(%arg0: i32, %arg1: i32, %arg2: memref<128x128xbf16, #tpu.memory_space<vmem>>, %arg3: memref<128x128xbf16, #tpu.memory_space<vmem>>, %arg4: memref<128x128xbf16, #tpu.memory_space<vmem>>, %arg5: memref<1x1x128xf32, #tpu.memory_space<vmem>>, %arg6: memref<1x1x128xf32, #tpu.memory_space<vmem>>, %arg7: memref<128x128xf32, #tpu.memory_space<vmem>>) attributes {dimension_semantics = [#tpu.dimension_semantics<parallel>, #tpu.dimension_semantics<arbitrary>], iteration_bounds = array<i64: 1, 1>, scalar_prefetch = 0 : i64, scratch_operands = 1 : i64, tpu.core_type = #tpu.core_type<tc>, window_params = [{transform_indices = @transform_0, window_bounds = array<i64: 128, 128>}, {transform_indices = @transform_1, window_bounds = array<i64: 128, 128>}, {transform_indices = @transform_2, window_bounds = array<i64: 128, 128>}, {transform_indices = @transform_3, window_bounds = array<i64: 1, 1, 128>}, {transform_indices = @transform_4, window_bounds = array<i64: 1, 1, 128>}]} {
    %c0_i32 = arith.constant 0 : i32
    %0 = arith.cmpi eq, %arg1, %c0_i32 : i32
    %1 = arith.extui %0 : i1 to i32
    %c0_i32_0 = arith.constant 0 : i32
    %2 = arith.cmpi ne, %1, %c0_i32_0 : i32
    scf.if %2 {
      %cst_10 = arith.constant 0.000000e+00 : f32
      %12 = vector.broadcast %cst_10 : f32 to vector<128x128xf32>
      %c0_11 = arith.constant 0 : index
      %c0_12 = arith.constant 0 : index
      %13 = vector.load %arg7[%c0_11, %c0_12] : memref<128x128xf32, #tpu.memory_space<vmem>>, vector<128x128xf32>
      tpu.vector_store %arg7[%c0_11, %c0_12], %12 {strides = array<i32>} : memref<128x128xf32, #tpu.memory_space<vmem>>, vector<128x128xf32>,
    } else {
    }
    %c0 = arith.constant 0 : index
    %c0_1 = arith.constant 0 : index
    %3 = vector.load %arg2[%c0, %c0_1] : memref<128x128xbf16, #tpu.memory_space<vmem>>, vector<128x128xbf16>
    %c0_2 = arith.constant 0 : index
    %c0_3 = arith.constant 0 : index
    %4 = vector.load %arg7[%c0_2, %c0_3] : memref<128x128xf32, #tpu.memory_space<vmem>>, vector<128x128xf32>
    %c0_4 = arith.constant 0 : index
    %c0_5 = arith.constant 0 : index
    %5 = vector.load %arg3[%c0_4, %c0_5] : memref<128x128xbf16, #tpu.memory_space<vmem>>, vector<128x128xbf16>
    %cst = arith.constant dense<0.000000e+00> : vector<128x128xf32>
    %6 = tpu.matmul %3, %5, %cst {dimension_numbers = #tpu.dot_dimension_numbers<[1], [0], [0], [1], [0, 0, 1, 1], [], []>} : vector<128x128xbf16>, vector<128x128xbf16>, vector<128x128xf32> -> vector<128x128xf32>
    %7 = arith.addf %4, %6 : vector<128x128xf32>
    %c0_6 = arith.constant 0 : index
    %c0_7 = arith.constant 0 : index
    %8 = vector.load %arg7[%c0_6, %c0_7] : memref<128x128xf32, #tpu.memory_space<vmem>>, vector<128x128xf32>
    tpu.vector_store %arg7[%c0_6, %c0_7], %7 {strides = array<i32>} : memref<128x128xf32, #tpu.memory_space<vmem>>, vector<128x128xf32>,
    %c0_i32_8 = arith.constant 0 : i32
    %9 = arith.cmpi eq, %arg1, %c0_i32_8 : i32
    %10 = arith.extui %9 : i1 to i32
    %c0_i32_9 = arith.constant 0 : i32
    %11 = arith.cmpi ne, %10, %c0_i32_9 : i32
    scf.if %11 {
      %c0_10 = arith.constant 0 : index
      %c0_11 = arith.constant 0 : index
      %12 = vector.load %arg7[%c0_10, %c0_11] : memref<128x128xf32, #tpu.memory_space<vmem>>, vector<128x128xf32>
      %13 = arith.truncf %12 : vector<128x128xf32> to vector<128x128xbf16>
      %c0_12 = arith.constant 0 : index
      %c0_13 = arith.constant 0 : index
      %14 = vector.load %arg4[%c0_12, %c0_13] : memref<128x128xbf16, #tpu.memory_space<vmem>>, vector<128x128xbf16>
      tpu.vector_store %arg4[%c0_12, %c0_13], %13 {strides = array<i32>} : memref<128x128xbf16, #tpu.memory_space<vmem>>, vector<128x128xbf16>,
      %cst_14 = arith.constant dense<0.000000e+00> : vector<128xf32>
      %15 = vector.multi_reduction <add>, %12, %cst_14 [0] : vector<128x128xf32> to vector<128xf32>
      %16 = vector.shape_cast %15 : vector<128xf32> to vector<1x1x128xf32>
      %c0_15 = arith.constant 0 : index
      %c0_16 = arith.constant 0 : index
      %c0_17 = arith.constant 0 : index
      %17 = vector.load %arg5[%c0_15, %c0_16, %c0_17] : memref<1x1x128xf32, #tpu.memory_space<vmem>>, vector<1x1x128xf32>
      tpu.vector_store %arg5[%c0_15, %c0_16, %c0_17], %16 {strides = array<i32>} : memref<1x1x128xf32, #tpu.memory_space<vmem>>, vector<1x1x128xf32>,
      %18 = arith.mulf %12, %12 : vector<128x128xf32>
      %cst_18 = arith.constant dense<0.000000e+00> : vector<128xf32>
      %19 = vector.multi_reduction <add>, %18, %cst_18 [0] : vector<128x128xf32> to vector<128xf32>
      %20 = vector.shape_cast %19 : vector<128xf32> to vector<1x1x128xf32>
      %c0_19 = arith.constant 0 : index
      %c0_20 = arith.constant 0 : index
      %c0_21 = arith.constant 0 : index
      %21 = vector.load %arg6[%c0_19, %c0_20, %c0_21] : memref<1x1x128xf32, #tpu.memory_space<vmem>>, vector<1x1x128xf32>
      tpu.vector_store %arg6[%c0_19, %c0_20, %c0_21], %20 {strides = array<i32>} : memref<1x1x128xf32, #tpu.memory_space<vmem>>, vector<1x1x128xf32>,
    } else {
    }
    return
  }
  func.func @transform_0(%arg0: i32, %arg1: i32) -> (i32, i32) {
    %c0_i32 = arith.constant 0 : i32
    return %arg0, %arg1 : i32, i32
  }
  func.func @transform_1(%arg0: i32, %arg1: i32) -> (i32, i32) {
    %c0_i32 = arith.constant 0 : i32
    %c0_i32_0 = arith.constant 0 : i32
    return %arg1, %c0_i32 : i32, i32
  }
  func.func @transform_2(%arg0: i32, %arg1: i32) -> (i32, i32) {
    %c0_i32 = arith.constant 0 : i32
    %c0_i32_0 = arith.constant 0 : i32
    return %arg0, %c0_i32 : i32, i32
  }
  func.func @transform_3(%arg0: i32, %arg1: i32) -> (i32, i32, i32) {
    %c0_i32 = arith.constant 0 : i32
    %c0_i32_0 = arith.constant 0 : i32
    %c0_i32_1 = arith.constant 0 : i32
    return %arg0, %c0_i32, %c0_i32_0 : i32, i32, i32
  }
  func.func @transform_4(%arg0: i32, %arg1: i32) -> (i32, i32, i32) {
    %c0_i32 = arith.constant 0 : i32
    %c0_i32_0 = arith.constant 0 : i32
    %c0_i32_1 = arith.constant 0 : i32
    return %arg0, %c0_i32, %c0_i32_0 : i32, i32, i32
  }
}

</mosaic_0001>

<bundles_post_ra>
// kernel: tpu_custom_call.1
= control target key start
LH: loop header
LB: loop body
LE: loop exit
PB: predicated region body
PF: predicated region fallthrough
CT: control target
= control target key end

     0   :  { %10 = vsyncpa [#allocation4], 0  ;;  %s975_s0 = inlined_call_operand.hbm [shape: bf16[128,128], index: 0, kind: input, shape index: {}]   ;;  %s976_s1 = inlined_call_operand.hbm [shape: bf16[128,128], index: 1, kind: input, shape index: {}]   ;;  %s977_s2 = inlined_call_operand.hbm [shape: bf16[128,128], index: 2, kind: output, shape index: {0}]   ;;  %s978_s3 = inlined_call_operand.hbm [shape: f32[1,1,128], index: 3, kind: output, shape index: {1}]   ;;  %s979_s4 = inlined_call_operand.hbm [shape: f32[1,1,128], index: 4, kind: output, shape index: {2}]  }
   0x1   :  { %11 = vsyncpa [#allocation7], 0 }
   0x2   :  { %12 = vsyncpa [#allocation5], 0 }
   0x3   :  { %13 = vsyncpa [#allocation10], 0  ;;  %s842_s15 = smov [#allocation3]   ;;  %s724_s19 = scalar_lea.hbm %s975_s0, 1024 }
   0x4   :  { %s19_s16 = sshll.u32 %s842_s15, 4  ;;  %p725_p0 = scmp.ne.s32.totalorder %s975_s0, %s724_s19  ;;  %s20_s16 = int_to_ptr.vmem [resolvable:$true] %s19_s16 }
   0x5   :  { %p728_p1 = scmp.lt.u32.totalorder %s724_s19, %s975_s0 }
   0x7   :  { %p730_p2 = pnand %p728_p1, %p725_p0 }
   0x9   :  { %733 = shalt.err (!%p730_p2)
}
   0xa   :  { %s734_s24 = scalar_lea.vmem %s20_s16, 1024  ;;  %p739_p4 = scmp.lt.s32.totalorder %s20_s16, %s20_s16 }
   0xb   :  { %p735_p3 = scmp.ne.s32.totalorder %s20_s16, %s734_s24  ;;  %p740_p5 = scmp.lt.s32.totalorder %s734_s24, %s734_s24 }
   0xd   :  { %p741_p6 = por %p740_p5, %p739_p4 }
   0xf   :  { %p742_p7 = pnand %p741_p6, %p735_p3 }
  0x11   :  { %745 = shalt.err (!%p742_p7)
}
  0x12   :  { %s843_s25 = smov 64   ;;  %s844_s26 = smov 4  }
  0x13   :  { %25 = dma.hbm_to_vmem [thread:$0]  %s975_s0, 1024, %s20_s16, [#allocation4], %s843_s25, %s843_s25, %s844_s26  }
  0x14   :  { %s845_s29 = smov [#allocation6]   ;;  %s746_s7 = scalar_lea.hbm %s976_s1, 1024 }
  0x15   :  { %s31_s30 = sshll.u32 %s845_s29, 4  ;;  %p747_p8 = scmp.ne.s32.totalorder %s976_s1, %s746_s7  ;;  %s32_s30 = int_to_ptr.vmem [resolvable:$true] %s31_s30 }
  0x16   :  { %p750_p9 = scmp.lt.u32.totalorder %s746_s7, %s976_s1 }
  0x18   :  { %p752_p10 = pnand %p750_p9, %p747_p8 }
  0x1a   :  { %755 = shalt.err (!%p752_p10)
}
  0x1b   :  { %s756_s12 = scalar_lea.vmem %s32_s30, 1024  ;;  %p761_p12 = scmp.lt.s32.totalorder %s32_s30, %s32_s30 }
  0x1c   :  { %p757_p11 = scmp.ne.s32.totalorder %s32_s30, %s756_s12  ;;  %p762_p13 = scmp.lt.s32.totalorder %s756_s12, %s756_s12 }
  0x1e   :  { %p763_p0 = por %p762_p13, %p761_p12 }
  0x20   :  { %p764_p1 = pnand %p763_p0, %p757_p11 }
  0x22   :  { %767 = shalt.err (!%p764_p1)
}
  0x23   :  { %37 = dma.hbm_to_vmem [thread:$0]  %s976_s1, 1024, %s32_s30, [#allocation7], %s843_s25, %s843_s25, %s844_s26  }
  0x24   :  { %834 = dma.done.wait [#allocation4], 1024  }
  0x25   :  { %835 = vsyncadd [#allocation4], 4294966272 }
  0x26   :  { %836 = dma.done.wait [#allocation7], 1024  }
  0x27   :  { %837 = vsyncadd [#allocation7], 4294966272  ;;  %v708_v0 = vld [vmem:[#allocation6] sm:$0xff]   ;;  %v709_v1 = vld [vmem:[#allocation6 + $0x8] sm:$0xff]   ;;  %s846_s1 = smov [#allocation8]  }
  0x28   :  { %653 = vmatprep.subr.bf16.mxu0 %v708_v0  ;;  %685 = vmatprep.subr.bf16.mxu1 %v708_v0  ;;  %v710_v2 = vld [vmem:[#allocation6 + $0x10] sm:$0xff]   ;;  %v711_v3 = vld [vmem:[#allocation6 + $0x18] sm:$0xff]   ;;  %v716_v4 = vld [vmem:[#allocation3] sm:$0xff]   ;;  %s502_s14 = sshll.u32 %s846_s1, 4  ;;  %s503_s14 = int_to_ptr.vmem [resolvable:$true] %s502_s14 }
  0x29   :  { %654 = vmatpush3.bf16.msra.mxu0 %v708_v0  ;;  %693 = vmatpush3.bf16.msra.mxu1 %v708_v0  ;;  %v712_v5 = vld [vmem:[#allocation6 + $0x20] sm:$0xff]   ;;  %v713_v7 = vld [vmem:[#allocation6 + $0x28] sm:$0xff]   ;;  %v714_v8 = vld [vmem:[#allocation6 + $0x30] sm:$0xff]   ;;  %s768_s15 = scalar_lea.vmem %s503_s14, 1024  ;;  %p773_p3 = scmp.lt.s32.totalorder %s503_s14, %s503_s14 }
  0x2a   :  { %655 = vmatprep.subr.bf16.mxu0 %v709_v1  ;;  %686 = vmatprep.subr.bf16.mxu1 %v709_v1  ;;  %v720_v6 = vld [vmem:[#allocation3 + $0x20] sm:$0xff]   ;;  %v715_v9 = vld [vmem:[#allocation6 + $0x38] sm:$0xff]   ;;  %v717_v10 = vld [vmem:[#allocation3 + $0x8] sm:$0xff]   ;;  %p769_p2 = scmp.ne.s32.totalorder %s503_s14, %s768_s15  ;;  %p774_p4 = scmp.lt.s32.totalorder %s768_s15, %s768_s15 }
  0x2b   :  { %669 = vmatprep.mubr.bf16.mxu0 %v716_v4  ;;  %677 = vmatprep.mubr.bf16.mxu1 %v720_v6  ;;  %v721_v11 = vld [vmem:[#allocation3 + $0x28] sm:$0xff]   ;;  %v718_v12 = vld [vmem:[#allocation3 + $0x10] sm:$0xff]   ;;  %v719_v14 = vld [vmem:[#allocation3 + $0x18] sm:$0xff]  }
  0x2c   :  { %v722_v13 = vld [vmem:[#allocation3 + $0x30] sm:$0xff]   ;;  %v723_v15 = vld [vmem:[#allocation3 + $0x38] sm:$0xff]   ;;  %p775_p5 = por %p774_p4, %p773_p3 }
  0x2d   :  { %656 = vmatpush3.bf16.msra.mxu0 %v709_v1  ;;  %694 = vmatpush3.bf16.msra.mxu1 %v709_v1 }
  0x2e   :  { %657 = vmatprep.subr.bf16.mxu0 %v710_v2  ;;  %687 = vmatprep.subr.bf16.mxu1 %v710_v2  ;;  %p776_p6 = pnand %p775_p5, %p769_p2 }
  0x31   :  { %658 = vmatpush3.bf16.msra.mxu0 %v710_v2  ;;  %695 = vmatpush3.bf16.msra.mxu1 %v710_v2 }
  0x32   :  { %659 = vmatprep.subr.bf16.mxu0 %v711_v3  ;;  %688 = vmatprep.subr.bf16.mxu1 %v711_v3 }
  0x35   :  { %660 = vmatpush3.bf16.msra.mxu0 %v711_v3  ;;  %696 = vmatpush3.bf16.msra.mxu1 %v711_v3 }
  0x36   :  { %661 = vmatprep.subr.bf16.mxu0 %v712_v5  ;;  %689 = vmatprep.subr.bf16.mxu1 %v712_v5 }
  0x39   :  { %662 = vmatpush3.bf16.msra.mxu0 %v712_v5  ;;  %697 = vmatpush3.bf16.msra.mxu1 %v712_v5 }
  0x3a   :  { %663 = vmatprep.subr.bf16.mxu0 %v713_v7  ;;  %690 = vmatprep.subr.bf16.mxu1 %v713_v7 }
  0x3d   :  { %664 = vmatpush3.bf16.msra.mxu0 %v713_v7  ;;  %698 = vmatpush3.bf16.msra.mxu1 %v713_v7 }
  0x3e   :  { %665 = vmatprep.subr.bf16.mxu0 %v714_v8  ;;  %691 = vmatprep.subr.bf16.mxu1 %v714_v8 }
  0x41   :  { %666 = vmatpush3.bf16.msra.mxu0 %v714_v8  ;;  %699 = vmatpush3.bf16.msra.mxu1 %v714_v8 }
  0x42   :  { %667 = vmatprep.subr.bf16.mxu0 %v715_v9  ;;  %692 = vmatprep.subr.bf16.mxu1 %v715_v9 }
  0x45   :  { %668 = vmatpush3.bf16.msra.mxu0 %v715_v9  ;;  %700 = vmatpush3.bf16.msra.mxu1 %v715_v9 }
  0x48   :  { %670 = vmatmul.mubr.bf16.vlgmr.msra.gmra.mrb[0].mxu0 %v717_v10  ;;  %678 = vmatmul.mubr.bf16.vlgmr.msra.gmra.mrb[0].mxu1 %v721_v11 }
  0x49   :  { %673 = vmatprep.mubr.bf16.mxu0 %v718_v12  ;;  %681 = vmatprep.mubr.bf16.mxu1 %v722_v13 }
  0x50   :  { %674 = vmatmul.mubr.bf16.gmra.mrb[4].mxu0 %v719_v14  ;;  %682 = vmatmul.mubr.bf16.gmra.mrb[4].mxu1 %v723_v15 }
 0x11b   :  { %v671_v16 = vpop.f32.mrb[0].mxu0  ;;  %v904_v17 = vpop.f32.mrb[0].mxu1 }
 0x11c   :  { %v243_v18 = vpop.f32.mrb[1].mxu0  ;;  %v906_v19 = vpop.f32.mrb[1].mxu1  ;;  %v461_v31 = vmul.f32 %v671_v16, %v671_v16 }
 0x11d   :  { %v672_v20 = vpop.f32.mrb[2].mxu0  ;;  %v908_v21 = vpop.f32.mrb[2].mxu1  ;;  %v459_v22 = vmul.f32 %v243_v18, %v243_v18  ;;  %v467_v61 = vmul.f32 %v906_v19, %v906_v19 }
 0x11e   :  { %v598_v23 = vpack.c.bf16 %v672_v20, %v671_v16  ;;  %v246_v24 = vpop.f32.mrb[3].mxu0  ;;  %v618_v25 = vpack.c.bf16 %v908_v21, %v904_v17  ;;  %v912_v26 = vpop.f32.mrb[3].mxu1  ;;  %v462_v34 = vmul.f32 %v672_v20, %v672_v20 }
 0x11f   :  { %v593_v27 = vpack.c.bf16 %v246_v24, %v243_v18  ;;  %v437_v28 = vadd.f32 %v246_v24, %v243_v18  ;;  %v460_v29 = vmul.f32 %v246_v24, %v246_v24  ;;  %v613_v30 = vpack.c.bf16 %v912_v26, %v906_v19 }
 0x120   :  { %630 = vst [vmem:[#allocation8 + $0x8] sm:$0xff] %v598_v23   ;;  %634 = vst [vmem:[#allocation8 + $0x28] sm:$0xff] %v618_v25  }
 0x121   :  { %594 = vst [vmem:[#allocation8] sm:$0xff] %v593_v27   ;;  %v438_v32 = vadd.f32 %v671_v16, %v437_v28  ;;  %v475_v33 = vadd.f32 %v460_v29, %v459_v22  ;;  %633 = vst [vmem:[#allocation8 + $0x20] sm:$0xff] %v613_v30  }
 0x123   :  { %v476_v35 = vadd.f32 %v475_v33, %v461_v31  ;;  %v675_v36 = vpop.f32.mrb[4].mxu0  ;;  %v439_v37 = vadd.f32 %v672_v20, %v438_v32  ;;  %v683_v38 = vpop.f32.mrb[4].mxu1 }
 0x124   :  { %v259_v39 = vpop.f32.mrb[5].mxu0  ;;  %v291_v40 = vpop.f32.mrb[5].mxu1  ;;  %v465_v55 = vmul.f32 %v675_v36, %v675_v36 }
 0x125   :  { %v440_v41 = vadd.f32 %v439_v37, %v259_v39  ;;  %v463_v42 = vmul.f32 %v259_v39, %v259_v39  ;;  %v477_v43 = vadd.f32 %v476_v35, %v462_v34  ;;  %v676_v44 = vpop.f32.mrb[6].mxu0  ;;  %v684_v45 = vpop.f32.mrb[6].mxu1 }
 0x126   :  { %v608_v46 = vpack.c.bf16 %v676_v44, %v675_v36  ;;  %v262_v47 = vpop.f32.mrb[7].mxu0  ;;  %v628_v48 = vpack.c.bf16 %v684_v45, %v683_v38  ;;  %v294_v49 = vpop.f32.mrb[7].mxu1  ;;  %v466_v58 = vmul.f32 %v676_v44, %v676_v44 }
 0x127   :  { %v478_v50 = vadd.f32 %v477_v43, %v463_v42  ;;  %v603_v51 = vpack.c.bf16 %v262_v47, %v259_v39  ;;  %v441_v52 = vadd.f32 %v440_v41, %v262_v47  ;;  %v464_v53 = vmul.f32 %v262_v47, %v262_v47 }
 0x128   :  { %632 = vst [vmem:[#allocation8 + $0x18] sm:$0xff] %v608_v46   ;;  %636 = vst [vmem:[#allocation8 + $0x38] sm:$0xff] %v628_v48   ;;  %v623_v54 = vpack.c.bf16 %v294_v49, %v291_v40 }
 0x129   :  { %631 = vst [vmem:[#allocation8 + $0x10] sm:$0xff] %v603_v51   ;;  %v442_v56 = vadd.f32 %v675_v36, %v441_v52  ;;  %v479_v57 = vadd.f32 %v478_v50, %v464_v53 }
 0x12a   :  { %635 = vst [vmem:[#allocation8 + $0x30] sm:$0xff] %v623_v54  }
 0x12b   :  { %v480_v59 = vadd.f32 %v479_v57, %v465_v55  ;;  %v443_v60 = vadd.f32 %v676_v44, %v442_v56 }
 0x12c   :  { %779 = shalt.err (!%p776_p6)
}
 0x12d   :  { %s780_s18 = scalar_lea.hbm %s977_s2, 1024 }
 0x12e   :  { %p781_p7 = scmp.ne.s32.totalorder %s977_s2, %s780_s18  ;;  %p784_p8 = scmp.lt.u32.totalorder %s780_s18, %s977_s2 }
 0x130   :  { %p786_p9 = pnand %p784_p8, %p781_p7 }
 0x132   :  { %789 = shalt.err (!%p786_p9)
}
 0x133   :  { %508 = dma.vmem_to_hbm [thread:$0]  %s503_s14, 1024, %s977_s2, [#allocation5], %s843_s25, %s843_s25, %s844_s26   ;;  %v444_v62 = vadd.f32 %v443_v60, %v906_v19  ;;  %v481_v63 = vadd.f32 %v480_v59, %v466_v58  ;;  %v468_v2 = vmul.f32 %v912_v26, %v912_v26  ;;  %v469_v3 = vmul.f32 %v904_v17, %v904_v17 }
 0x134   :  { %v470_v6 = vmul.f32 %v908_v21, %v908_v21  ;;  %v471_v9 = vmul.f32 %v291_v40, %v291_v40  ;;  %v472_v14 = vmul.f32 %v294_v49, %v294_v49  ;;  %v473_v15 = vmul.f32 %v683_v38, %v683_v38  ;;  %s847_s2 = smov [#allocation9]   ;;  %s848_s26 = smov [#allocation11]  }
 0x135   :  { %v482_v0 = vadd.f32 %v481_v63, %v467_v61  ;;  %v445_v1 = vadd.f32 %v444_v62, %v912_v26  ;;  %v474_v19 = vmul.f32 %v684_v45, %v684_v45  ;;  %s515_s25 = sshll.u32 %s847_s2, 4  ;;  %s525_s27 = sshll.u32 %s848_s26, 4  ;;  %s516_s25 = int_to_ptr.vmem [resolvable:$true] %s515_s25  ;;  %s943_s27 = int_to_ptr.vmem [resolvable:$true] %s525_s27 }
 0x136   :  { %s790_s28 = scalar_lea.vmem %s516_s25, 16  ;;  %s794_s29 = scalar_lea.vmem %s516_s25, 32 }
 0x137   :  { %v446_v4 = vadd.f32 %v904_v17, %v445_v1  ;;  %v483_v5 = vadd.f32 %v482_v0, %v468_v2  ;;  %p791_p10 = scmp.ne.s32.totalorder %s516_s25, %s790_s28  ;;  %p795_p11 = scmp.lt.s32.totalorder %s516_s25, %s516_s25 }
 0x138   :  { %p796_p12 = scmp.lt.s32.totalorder %s794_s29, %s790_s28 }
 0x139   :  { %v484_v7 = vadd.f32 %v483_v5, %v469_v3  ;;  %v447_v8 = vadd.f32 %v908_v21, %v446_v4 }
 0x13a   :  { %p797_p13 = por %p796_p12, %p795_p11 }
 0x13b   :  { %v448_v10 = vadd.f32 %v447_v8, %v291_v40  ;;  %v485_v11 = vadd.f32 %v484_v7, %v470_v6 }
 0x13c   :  { %p798_p0 = pnand %p797_p13, %p791_p10 }
 0x13d   :  { %v486_v12 = vadd.f32 %v485_v11, %v471_v9  ;;  %v449_v13 = vadd.f32 %v448_v10, %v294_v49 }
 0x13f   :  { %v450_v16 = vadd.f32 %v683_v38, %v449_v13  ;;  %v487_v18 = vadd.f32 %v486_v12, %v472_v14 }
 0x141   :  { %v451_v20 = vadd.f32 %v684_v45, %v450_v16  ;;  %v488_v22 = vadd.f32 %v487_v18, %v473_v15 }
 0x143   :  { %v452_v17 = vrot.slane %v451_v20, 4  ;;  %v489_v23 = vadd.f32 %v488_v22, %v474_v19 }
 0x145   :  { %v490_v24 = vrot.slane %v489_v23, 4  ;;  %v453_v25 = vadd.f32 %v452_v17, %v451_v20 }
 0x147   :  { %v454_v26 = vrot.slane %v453_v25, 2  ;;  %v491_v27 = vadd.f32 %v490_v24, %v489_v23 }
 0x149   :  { %v455_v28 = vadd.f32 %v454_v26, %v453_v25  ;;  %v492_v21 = vrot.slane %v491_v27, 2 }
 0x14b   :  { %v456_v29 = vrot.slane %v455_v28, 1  ;;  %v493_v30 = vadd.f32 %v492_v21, %v491_v27 }
 0x14d   :  { %v457_v31 = vadd.f32 %v456_v29, %v455_v28  ;;  %v494_v32 = vrot.slane %v493_v30, 1 }
 0x14f   :  { %458 = vst [vmem:[#allocation9] sm:$0x1] %v457_v31  ;;  %v495_v33 = vadd.f32 %v494_v32, %v493_v30 }
 0x150   :  { %801 = shalt.err (!%p798_p0)
}
 0x151   :  { %s802_s6 = scalar_lea.hbm %s978_s3, 16 }
 0x152   :  { %p803_p1 = scmp.ne.s32.totalorder %s978_s3, %s802_s6  ;;  %p806_p2 = scmp.lt.u32.totalorder %s802_s6, %s978_s3 }
 0x154   :  { %p808_p3 = pnand %p806_p2, %p803_p1 }
 0x156   :  { %811 = shalt.err (!%p808_p3)
}
 0x157   :  { %518 = dma.vmem_to_hbm [thread:$0]  %s516_s25, 16, %s978_s3, [#allocation10]   ;;  %496 = vst [vmem:[#allocation11] sm:$0x1] %v495_v33 }
 0x158   :  { %s812_s0 = scalar_lea.vmem %s943_s27, 16  ;;  %s816_s13 = scalar_lea.vmem %s943_s27, 32 }
 0x159   :  { %p813_p4 = scmp.ne.s32.totalorder %s943_s27, %s812_s0  ;;  %p817_p5 = scmp.lt.s32.totalorder %s943_s27, %s943_s27 }
 0x15a   :  { %p818_p6 = scmp.lt.s32.totalorder %s816_s13, %s812_s0 }
 0x15c   :  { %p819_p7 = por %p818_p6, %p817_p5 }
 0x15e   :  { %p820_p8 = pnand %p819_p7, %p813_p4 }
 0x160   :  { %823 = shalt.err (!%p820_p8)
}
 0x161   :  { %s824_s15 = scalar_lea.hbm %s979_s4, 16 }
 0x162   :  { %p825_p9 = scmp.ne.s32.totalorder %s979_s4, %s824_s15  ;;  %p828_p10 = scmp.lt.u32.totalorder %s824_s15, %s979_s4 }
 0x164   :  { %p830_p11 = pnand %p828_p10, %p825_p9 }
 0x166   :  { %833 = shalt.err (!%p830_p11)
}
 0x167   :  { %528 = dma.vmem_to_hbm [thread:$0]  %s943_s27, 16, %s979_s4, [#allocation10]  }
 0x168   :  { %838 = dma.done.wait [#allocation5], 1024  }
 0x169   :  { %839 = vsyncadd [#allocation5], 4294966272 }
 0x16a   :  { %840 = dma.done.wait [#allocation10], 32  }
 0x16b   :  { %841 = vsyncadd [#allocation10], 4294967264 }
 0x16c   :  { %538 = vsyncpa [#allocation4], 1 }
 0x16d   :  { %539 = vsyncpa [#allocation7], 1 }
 0x16e   :  { %540 = vsyncpa [#allocation5], 1 }
 0x16f   :  { %541 = vsyncpa [#allocation10], 1 }

</bundles_post_ra>
